<compile_context>
chip_gen: v7x
topology: tpu7x:2x2x1
jax: 0.10.0
libtpu: 0.0.40
codegen_flags: <defaults>
</compile_context>

<pallas_src>
import functools

import jax
import jax.numpy as jnp
from jax.experimental import pallas as pl
from jax.experimental.pallas import tpu as pltpu

LANE = 128        # TPU lane width
SUBLANE = 8       # f32 sublane multiple


def _round_up(n, m):
    return ((n + m - 1) // m) * m


def dqn_kernel(x_ref, w1_ref, b1_ref, w2_ref, b2_ref, w3_ref, b3_ref, out_ref,
               *, precision=None):
    # Shapes (per grid step):
    #   x_ref  : (tile_b, S_pad)   S_pad = state_size rounded up to 8 (zero cols)
    #   w1_ref : (S_pad, 32)       zero rows in the padded region
    #   b1_ref : (1, 32)      w2_ref: (32, 32)   b2_ref: (1, 32)
    #   w3_ref : (32, 128)         out-features zero-padded to one full lane
    #   b3_ref : (1, A)       out_ref: (tile_b, A)   A = action_size (unpadded)
    a = out_ref.shape[1]

    x = x_ref[...]

    # fc1 + ReLU (MXU; K padded to 8 so the whole network is matmuls).
    h1 = jnp.dot(x, w1_ref[...], preferred_element_type=jnp.float32,
                 precision=precision)
    h1 = jnp.maximum(h1 + b1_ref[...], 0.0)

    # fc2 + ReLU (MXU, 32x32).
    h2 = jnp.dot(h1, w2_ref[...], preferred_element_type=jnp.float32,
                 precision=precision)
    h2 = jnp.maximum(h2 + b2_ref[...], 0.0)

    # fc3 (MXU, 32x128 padded pass); store only the real A lanes to HBM.
    h3 = jnp.dot(h2, w3_ref[...], preferred_element_type=jnp.float32,
                 precision=precision)
    out_ref[...] = (h3[:, :a] + b3_ref[...]).astype(out_ref.dtype)


def dqn_forward(x, params, tile_b=None, precision=None):
    """x: (B, state_size) f32.  params: weights (in,out) and biases (1,out)."""
    w1, b1 = params["w1"], params["b1"]
    w2, b2 = params["w2"], params["b2"]
    w3, b3 = params["w3"], params["b3"]

    B, S = x.shape
    A = w3.shape[1]
    H = w1.shape[1]

    # --- fc1 contraction dim padded to a sublane multiple (MXU-friendly). ---
    S_pad = _round_up(S, SUBLANE)
    if S_pad != S:
        w1 = jnp.pad(w1, ((0, S_pad - S), (0, 0)))

    # --- fc3 out-features padded to one full lane for the MXU pass only; ----
    # --- the HBM output stays (B_pad, A) (no padded writeback).          ----
    A_pad = _round_up(A, LANE)
    if A_pad != A:
        w3 = jnp.pad(w3, ((0, 0), (0, A_pad - A)))

    # --- Batch tile: >= 2 grid steps so both v7x TensorCores are used,   ----
    # --- 256..4096 rows to amortize per-step overhead and stay well      ----
    # --- inside the default scoped VMEM limit on v5e/v6e/v7x.            ----
    B_pad8 = _round_up(B, SUBLANE)
    if tile_b is None:
        target_steps = 4
        tile_b = min(4096, max(256, pl.cdiv(B_pad8, target_steps)))
    tile_b = max(SUBLANE, _round_up(min(tile_b, B_pad8), SUBLANE))

    B_pad = _round_up(B, tile_b)
    x = jnp.pad(x, ((0, B_pad - B), (0, S_pad - S)))   # zero rows/cols, sliced off below

    grid = (B_pad // tile_b,)

    kernel = functools.partial(dqn_kernel, precision=precision)

    out = pl.pallas_call(
        kernel,
        out_shape=jax.ShapeDtypeStruct((B_pad, A), jnp.float32),
        grid=grid,
        in_specs=[
            pl.BlockSpec((tile_b, S_pad), lambda i: (i, 0)),   # x: streamed over batch
            pl.BlockSpec(w1.shape, lambda i: (0, 0)),          # weights/biases: VMEM-resident
            pl.BlockSpec(b1.shape, lambda i: (0, 0)),
            pl.BlockSpec(w2.shape, lambda i: (0, 0)),
            pl.BlockSpec(b2.shape, lambda i: (0, 0)),
            pl.BlockSpec(w3.shape, lambda i: (0, 0)),
            pl.BlockSpec(b3.shape, lambda i: (0, 0)),
        ],
        out_specs=pl.BlockSpec((tile_b, A), lambda i: (i, 0)), # un-padded output block
        compiler_params=pltpu.CompilerParams(
            dimension_semantics=("parallel",),                 # megacore sharding on v7x
        ),
    )(x, w1, b1, w2, b2, w3, b3)

    return out[:B, :]


def init_params(key, state_size, action_size, hidden=32):
    """Synthetic init mimicking PyTorch Linear's uniform(-1/sqrt(in), 1/sqrt(in))."""
    ks = jax.random.split(key, 6)

    def uniform(k, shape, fan_in):
        bound = 1.0 / jnp.sqrt(jnp.float32(fan_in))
        return jax.random.uniform(k, shape, jnp.float32, -bound, bound)

    return {
        "w1": uniform(ks[0], (state_size, hidden), state_size),
        "b1": uniform(ks[1], (1, hidden), state_size),
        "w2": uniform(ks[2], (hidden, hidden), hidden),
        "b2": uniform(ks[3], (1, hidden), hidden),
        "w3": uniform(ks[4], (hidden, action_size), hidden),
        "b3": uniform(ks[5], (1, action_size), hidden),
    }


def dqn_reference(x, p):
    """Full-precision f32 reference."""
    hp = functools.partial(jnp.dot, precision=jax.lax.Precision.HIGHEST)
    h1 = jnp.maximum(hp(x, p["w1"]) + p["b1"], 0.0)
    h2 = jnp.maximum(hp(h1, p["w2"]) + p["b2"], 0.0)
    return hp(h2, p["w3"]) + p["b3"]


if __name__ == "__main__":
    key = jax.random.PRNGKey(0)
    k_x, k_p, k_x2 = jax.random.split(key, 3)

    # Maze DQN: small flat state vector, few actions.
    batch, state_size, action_size = 8, 4, 4
    params = init_params(k_p, state_size, action_size)

    # Tolerance: kernel matmuls use DEFAULT precision (may truncate operands to
    # bf16 on the MXU); for 8/32-wide contractions of O(1) values the error vs.
    # the f32 HIGHEST reference is ~1e-3, so 2e-2 is comfortably safe.
    ATOL = RTOL = 2e-2

    # Case 1: toy batch, single grid step.
    x = jax.random.normal(k_x, (batch, state_size), jnp.float32)
    out = jax.block_until_ready(dqn_forward(x, params))
    ref = dqn_reference(x, params)
    assert out.shape == (batch, action_size)
    assert jnp.allclose(out, ref, atol=ATOL, rtol=RTOL)

    # Case 2: larger batch with a non-multiple tile -> exercises the multi-step
    # pipelined grid and the padded-tail path.
    x2 = jax.random.normal(k_x2, (300, state_size), jnp.float32)
    out2 = jax.block_until_ready(dqn_forward(x2, params, tile_b=128))
    ref2 = dqn_reference(x2, params)
    assert out2.shape == (300, action_size)
    assert jnp.allclose(out2, ref2, atol=ATOL, rtol=RTOL)

    print("KERNEL_OK")
</pallas_src>

<mosaic_0001>
module attributes {stable_mosaic.version = 11 : i64} {
  func.func @dqn_kernel(%arg0: i32, %arg1: memref<8x8xf32, #tpu.memory_space<vmem>>, %arg2: memref<8x32xf32, #tpu.memory_space<vmem>>, %arg3: memref<1x32xf32, #tpu.memory_space<vmem>>, %arg4: memref<32x32xf32, #tpu.memory_space<vmem>>, %arg5: memref<1x32xf32, #tpu.memory_space<vmem>>, %arg6: memref<32x128xf32, #tpu.memory_space<vmem>>, %arg7: memref<1x4xf32, #tpu.memory_space<vmem>>, %arg8: memref<8x4xf32, #tpu.memory_space<vmem>>) attributes {dimension_semantics = [#tpu.dimension_semantics<parallel>], iteration_bounds = array<i64: 1>, scalar_prefetch = 0 : i64, scratch_operands = 0 : i64, tpu.core_type = #tpu.core_type<tc>, window_params = [{transform_indices = @transform_0, window_bounds = array<i64: 8, 8>}, {pipeline_mode = #tpu.pipeline_mode<synchronous>, transform_indices = @transform_1, window_bounds = array<i64: 8, 32>}, {pipeline_mode = #tpu.pipeline_mode<synchronous>, transform_indices = @transform_2, window_bounds = array<i64: 1, 32>}, {pipeline_mode = #tpu.pipeline_mode<synchronous>, transform_indices = @transform_3, window_bounds = array<i64: 32, 32>}, {pipeline_mode = #tpu.pipeline_mode<synchronous>, transform_indices = @transform_4, window_bounds = array<i64: 1, 32>}, {pipeline_mode = #tpu.pipeline_mode<synchronous>, transform_indices = @transform_5, window_bounds = array<i64: 32, 128>}, {pipeline_mode = #tpu.pipeline_mode<synchronous>, transform_indices = @transform_6, window_bounds = array<i64: 1, 4>}, {transform_indices = @transform_7, window_bounds = array<i64: 8, 4>}]} {
    %c0 = arith.constant 0 : index
    %c0_0 = arith.constant 0 : index
    %0 = vector.load %arg1[%c0, %c0_0] : memref<8x8xf32, #tpu.memory_space<vmem>>, vector<8x8xf32>
    %c0_1 = arith.constant 0 : index
    %c0_2 = arith.constant 0 : index
    %1 = vector.load %arg2[%c0_1, %c0_2] : memref<8x32xf32, #tpu.memory_space<vmem>>, vector<8x32xf32>
    %cst = arith.constant dense<0.000000e+00> : vector<8x32xf32>
    %2 = tpu.matmul %0, %1, %cst {dimension_numbers = #tpu.dot_dimension_numbers<[1], [0], [0], [1], [0, 0, 1, 1], [], []>} : vector<8x8xf32>, vector<8x32xf32>, vector<8x32xf32> -> vector<8x32xf32>
    %c0_3 = arith.constant 0 : index
    %c0_4 = arith.constant 0 : index
    %3 = vector.load %arg3[%c0_3, %c0_4] : memref<1x32xf32, #tpu.memory_space<vmem>>, vector<1x32xf32>
    %4 = vector.broadcast %3 : vector<1x32xf32> to vector<8x32xf32>
    %5 = arith.addf %2, %4 : vector<8x32xf32>
    %cst_5 = arith.constant 0.000000e+00 : f32
    %6 = vector.broadcast %cst_5 : f32 to vector<8x32xf32>
    %7 = arith.maximumf %5, %6 : vector<8x32xf32>
    %c0_6 = arith.constant 0 : index
    %c0_7 = arith.constant 0 : index
    %8 = vector.load %arg4[%c0_6, %c0_7] : memref<32x32xf32, #tpu.memory_space<vmem>>, vector<32x32xf32>
    %cst_8 = arith.constant dense<0.000000e+00> : vector<8x32xf32>
    %9 = tpu.matmul %7, %8, %cst_8 {dimension_numbers = #tpu.dot_dimension_numbers<[1], [0], [0], [1], [0, 0, 1, 1], [], []>} : vector<8x32xf32>, vector<32x32xf32>, vector<8x32xf32> -> vector<8x32xf32>
    %c0_9 = arith.constant 0 : index
    %c0_10 = arith.constant 0 : index
    %10 = vector.load %arg5[%c0_9, %c0_10] : memref<1x32xf32, #tpu.memory_space<vmem>>, vector<1x32xf32>
    %11 = vector.broadcast %10 : vector<1x32xf32> to vector<8x32xf32>
    %12 = arith.addf %9, %11 : vector<8x32xf32>
    %cst_11 = arith.constant 0.000000e+00 : f32
    %13 = vector.broadcast %cst_11 : f32 to vector<8x32xf32>
    %14 = arith.maximumf %12, %13 : vector<8x32xf32>
    %c0_12 = arith.constant 0 : index
    %c0_13 = arith.constant 0 : index
    %15 = vector.load %arg6[%c0_12, %c0_13] : memref<32x128xf32, #tpu.memory_space<vmem>>, vector<32x128xf32>
    %cst_14 = arith.constant dense<0.000000e+00> : vector<8x128xf32>
    %16 = tpu.matmul %14, %15, %cst_14 {dimension_numbers = #tpu.dot_dimension_numbers<[1], [0], [0], [1], [0, 0, 1, 1], [], []>} : vector<8x32xf32>, vector<32x128xf32>, vector<8x128xf32> -> vector<8x128xf32>
    %17 = vector.extract_strided_slice %16 {offsets = [0, 0], sizes = [8, 4], strides = [1, 1]} : vector<8x128xf32> to vector<8x4xf32>
    %c0_15 = arith.constant 0 : index
    %c0_16 = arith.constant 0 : index
    %18 = vector.load %arg7[%c0_15, %c0_16] : memref<1x4xf32, #tpu.memory_space<vmem>>, vector<1x4xf32>
    %19 = vector.broadcast %18 : vector<1x4xf32> to vector<8x4xf32>
    %20 = arith.addf %17, %19 : vector<8x4xf32>
    %c0_17 = arith.constant 0 : index
    %c0_18 = arith.constant 0 : index
    %21 = vector.load %arg8[%c0_17, %c0_18] : memref<8x4xf32, #tpu.memory_space<vmem>>, vector<8x4xf32>
    tpu.vector_store %arg8[%c0_17, %c0_18], %20 {strides = array<i32>} : memref<8x4xf32, #tpu.memory_space<vmem>>, vector<8x4xf32>,
    return
  }
  func.func @transform_0(%arg0: i32) -> (i32, i32) {
    %c0_i32 = arith.constant 0 : i32
    %c0_i32_0 = arith.constant 0 : i32
    return %arg0, %c0_i32 : i32, i32
  }
  func.func @transform_1(%arg0: i32) -> (i32, i32) {
    %c0_i32 = arith.constant 0 : i32
    %c0_i32_0 = arith.constant 0 : i32
    %c0_i32_1 = arith.constant 0 : i32
    return %c0_i32, %c0_i32_0 : i32, i32
  }
  func.func @transform_2(%arg0: i32) -> (i32, i32) {
    %c0_i32 = arith.constant 0 : i32
    %c0_i32_0 = arith.constant 0 : i32
    %c0_i32_1 = arith.constant 0 : i32
    return %c0_i32, %c0_i32_0 : i32, i32
  }
  func.func @transform_3(%arg0: i32) -> (i32, i32) {
    %c0_i32 = arith.constant 0 : i32
    %c0_i32_0 = arith.constant 0 : i32
    %c0_i32_1 = arith.constant 0 : i32
    return %c0_i32, %c0_i32_0 : i32, i32
  }
  func.func @transform_4(%arg0: i32) -> (i32, i32) {
    %c0_i32 = arith.constant 0 : i32
    %c0_i32_0 = arith.constant 0 : i32
    %c0_i32_1 = arith.constant 0 : i32
    return %c0_i32, %c0_i32_0 : i32, i32
  }
  func.func @transform_5(%arg0: i32) -> (i32, i32) {
    %c0_i32 = arith.constant 0 : i32
    %c0_i32_0 = arith.constant 0 : i32
    %c0_i32_1 = arith.constant 0 : i32
    return %c0_i32, %c0_i32_0 : i32, i32
  }
  func.func @transform_6(%arg0: i32) -> (i32, i32) {
    %c0_i32 = arith.constant 0 : i32
    %c0_i32_0 = arith.constant 0 : i32
    %c0_i32_1 = arith.constant 0 : i32
    return %c0_i32, %c0_i32_0 : i32, i32
  }
  func.func @transform_7(%arg0: i32) -> (i32, i32) {
    %c0_i32 = arith.constant 0 : i32
    %c0_i32_0 = arith.constant 0 : i32
    return %arg0, %c0_i32 : i32, i32
  }
}

</mosaic_0001>

<bundles_post_ra>
// kernel: tpu_custom_call.1
= control target key start
LH: loop header
LB: loop body
LE: loop exit
PB: predicated region body
PF: predicated region fallthrough
CT: control target
= control target key end

     0   :  { %12 = vsyncpa [#allocation3], 0  ;;  %s610_s0 = inlined_call_operand.hbm [shape: f32[8,8], index: 0, kind: input, shape index: {}]   ;;  %s611_s1 = inlined_call_operand.hbm [shape: f32[8,32], index: 1, kind: input, shape index: {}]   ;;  %s612_s2 = inlined_call_operand.vmem [shape: f32[1,32], index: 2, kind: input, shape index: {}]   ;;  %s613_s3 = inlined_call_operand.hbm [shape: f32[32,32], index: 3, kind: input, shape index: {}]   ;;  %s614_s4 = inlined_call_operand.vmem [shape: f32[1,32], index: 4, kind: input, shape index: {}]   ;;  %s615_s5 = inlined_call_operand.hbm [shape: f32[32,128], index: 5, kind: input, shape index: {}]   ;;  %s616_s6 = inlined_call_operand.vmem [shape: f32[1,4], index: 6, kind: input, shape index: {}]   ;;  %s617_s7 = inlined_call_operand.vmem [shape: f32[8,4], index: 7, kind: output, shape index: {}]  }
   0x1   :  { %13 = vsyncpa [#allocation5], 0 }
   0x2   :  { %14 = vsyncpa [#allocation8], 0  ;;  %s501_s24 = smov [#allocation4]   ;;  %s502_s26 = smov [#allocation2]  }
   0x3   :  { %s31_s25 = sshll.u32 %s501_s24, 4  ;;  %s21_s27 = sshll.u32 %s502_s26, 4  ;;  %s32_s25 = int_to_ptr.vmem [resolvable:$true] %s31_s25  ;;  %s22_s27 = int_to_ptr.vmem [resolvable:$true] %s21_s27 }
   0x4   :  { %s407_s30 = scalar_lea.hbm %s611_s1, 128 }
   0x5   :  { %p408_p0 = scmp.ne.s32.totalorder %s611_s1, %s407_s30  ;;  %p411_p1 = scmp.lt.u32.totalorder %s407_s30, %s611_s1 }
   0x7   :  { %p413_p2 = pnand %p411_p1, %p408_p0 }
   0x9   :  { %416 = shalt.err (!%p413_p2)
}
   0xa   :  { %s417_s12 = scalar_lea.vmem %s32_s25, 128  ;;  %p422_p4 = scmp.lt.s32.totalorder %s32_s25, %s32_s25 }
   0xb   :  { %p418_p3 = scmp.ne.s32.totalorder %s32_s25, %s417_s12  ;;  %p423_p5 = scmp.lt.s32.totalorder %s417_s12, %s417_s12 }
   0xd   :  { %p424_p6 = por %p423_p5, %p422_p4 }
   0xf   :  { %p425_p7 = pnand %p424_p6, %p418_p3 }
  0x11   :  { %428 = shalt.err (!%p425_p7)
}
  0x12   :  { %34 = dma.hbm_to_vmem [thread:$0]  %s611_s1, 128, %s32_s25, [#allocation5]  }
  0x13   :  { %s429_s17 = scalar_lea.hbm %s610_s0, 128 }
  0x14   :  { %p430_p8 = scmp.ne.s32.totalorder %s610_s0, %s429_s17  ;;  %p433_p9 = scmp.lt.u32.totalorder %s429_s17, %s610_s0 }
  0x16   :  { %p435_p10 = pnand %p433_p9, %p430_p8 }
  0x18   :  { %438 = shalt.err (!%p435_p10)
}
  0x19   :  { %s439_s22 = scalar_lea.vmem %s22_s27, 128  ;;  %p444_p12 = scmp.lt.s32.totalorder %s22_s27, %s22_s27 }
  0x1a   :  { %p440_p11 = scmp.ne.s32.totalorder %s22_s27, %s439_s22  ;;  %p445_p13 = scmp.lt.s32.totalorder %s439_s22, %s439_s22 }
  0x1c   :  { %p446_p0 = por %p445_p13, %p444_p12 }
  0x1e   :  { %p447_p1 = pnand %p446_p0, %p440_p11 }
  0x20   :  { %450 = shalt.err (!%p447_p1)
}
  0x21   :  { %24 = dma.hbm_to_vmem [thread:$0]  %s610_s0, 128, %s22_s27, [#allocation3]  }
  0x22   :  { %s503_s24 = smov [#allocation6]   ;;  %s451_s29 = scalar_lea.hbm %s613_s3, 512 }
  0x23   :  { %s42_s25 = sshll.u32 %s503_s24, 4  ;;  %p452_p2 = scmp.ne.s32.totalorder %s613_s3, %s451_s29  ;;  %s43_s25 = int_to_ptr.vmem [resolvable:$true] %s42_s25 }
  0x24   :  { %p455_p3 = scmp.lt.u32.totalorder %s451_s29, %s613_s3 }
  0x26   :  { %p457_p4 = pnand %p455_p3, %p452_p2 }
  0x28   :  { %460 = shalt.err (!%p457_p4)
}
  0x29   :  { %s461_s11 = scalar_lea.vmem %s43_s25, 512  ;;  %p466_p6 = scmp.lt.s32.totalorder %s43_s25, %s43_s25 }
  0x2a   :  { %p462_p5 = scmp.ne.s32.totalorder %s43_s25, %s461_s11  ;;  %p467_p7 = scmp.lt.s32.totalorder %s461_s11, %s461_s11 }
  0x2c   :  { %p468_p8 = por %p467_p7, %p466_p6 }
  0x2e   :  { %p469_p9 = pnand %p468_p8, %p462_p5 }
  0x30   :  { %472 = shalt.err (!%p469_p9)
}
  0x31   :  { %s504_s0 = smov 128   ;;  %s505_s27 = smov 8  }
  0x32   :  { %48 = dma.hbm_to_vmem [thread:$0]  %s613_s3, 512, %s43_s25, [#allocation5], %s504_s0, %s504_s0, %s505_s27  }
  0x33   :  { %s506_s14 = smov [#allocation7]   ;;  %s473_s18 = scalar_lea.hbm %s615_s5, 512 }
  0x34   :  { %s56_s15 = sshll.u32 %s506_s14, 4  ;;  %p474_p10 = scmp.ne.s32.totalorder %s615_s5, %s473_s18  ;;  %s57_s15 = int_to_ptr.vmem [resolvable:$true] %s56_s15 }
  0x35   :  { %p477_p11 = scmp.lt.u32.totalorder %s473_s18, %s615_s5 }
  0x37   :  { %p479_p12 = pnand %p477_p11, %p474_p10 }
  0x39   :  { %482 = shalt.err (!%p479_p12)
}
  0x3a   :  { %s483_s1 = scalar_lea.vmem %s57_s15, 512  ;;  %p488_p0 = scmp.lt.s32.totalorder %s57_s15, %s57_s15 }
  0x3b   :  { %p484_p13 = scmp.ne.s32.totalorder %s57_s15, %s483_s1  ;;  %p489_p1 = scmp.lt.s32.totalorder %s483_s1, %s483_s1 }
  0x3d   :  { %p490_p2 = por %p489_p1, %p488_p0 }
  0x3f   :  { %p491_p3 = pnand %p490_p2, %p484_p13 }
  0x41   :  { %494 = shalt.err (!%p491_p3)
}
  0x42   :  { %62 = dma.hbm_to_vmem [thread:$0]  %s615_s5, 512, %s57_s15, [#allocation8], %s504_s0, %s504_s0, %s505_s27  }
  0x43   :  { %495 = dma.done.wait [#allocation3], 128  }
  0x44   :  { %496 = vsyncadd [#allocation3], 4294967168 }
  0x45   :  { %497 = dma.done.wait [#allocation5], 640  }
  0x46   :  { %498 = vsyncadd [#allocation5], 4294966656 }
  0x47   :  { %499 = dma.done.wait [#allocation8], 512  }
  0x48   :  { %500 = vsyncadd [#allocation8], 4294966784  ;;  %v507_v0 = vmov 0.0   ;;  %vm508_vm0 = vmmov 0   ;;  %v509_v1 = vmov 0.0|0.0   ;;  %vm86_vm1 = vcmask 64512  }
  0x49   :  { %359 = vmatprep.subr.mxu0 %v507_v0  ;;  %361 = vmatprep.mubr.msk.f32.mxu0 %vm508_vm0, %v507_v0  ;;  %v78_v2 = vld [vmem:[#allocation4] sm:$0xff]  ;;  %v77_v3 = vld [vmem:[#allocation2] sm:$0xff]  ;;  %v161_v4 = vld [vmem:[#allocation6] sm:$0xff]  ;;  %vm172_vm2 = vcmask 261120   ;;  %vm332_vm3 = vcmask 31744  }
  0x4a   :  { %386 = vmatprep.subr.bf16.mxu1 %v509_v1  ;;  %372 = vmatprep.mubr.msk.f32.mxu1 %vm508_vm0, %v507_v0  ;;  %v162_v5 = vld [vmem:[#allocation6 + $0x8] sm:$0xff]  ;;  %v163_v7 = vld [vmem:[#allocation6 + $0x10] sm:$0xff]  ;;  %v164_v8 = vld [vmem:[#allocation6 + $0x18] sm:$0xff] }
  0x4b   :  { %360 = vmatpush3.msra.mxu0 %v78_v2  ;;  %v387_v6 = vpack.c.bf16 %v162_v5, %v161_v4  ;;  %v390_v9 = vpack.c.bf16 %v164_v8, %v163_v7  ;;  %v247_v10 = vld [vmem:[#allocation7] sm:$0xff]  ;;  %v248_v11 = vld [vmem:[#allocation7 + $0x8] sm:$0xff]  ;;  %v341_v13 = vld [vmem:[%s612_s2] ss:$0 sm:$0xff] }
  0x4c   :  { %362 = vmatmul.mubr.msk.f32.vlgmr.msra.gmra.mrb[0].mxu0 %vm86_vm1, %v77_v3  ;;  %392 = vmatprep.subr.bf16.mxu0 %v509_v1  ;;  %v393_v12 = vpack.c.bf16 %v248_v11, %v247_v10  ;;  %v249_v18 = vld [vmem:[#allocation7 + $0x10] sm:$0xff]  ;;  %v250_v19 = vld [vmem:[#allocation7 + $0x18] sm:$0xff] }
  0x4d   :  { %383 = vmatprep.mubr.msk.f32.mxu0 %vm508_vm0, %v507_v0  ;;  %388 = vmatpush3.bf16.msra.mxu1 %v387_v6  ;;  %v396_v20 = vpack.c.bf16 %v250_v19, %v249_v18  ;;  %v343_v21 = vld [vmem:[%s614_s4] ss:$0 sm:$0xff] }
  0x4e   :  { %389 = vmatprep.subr.bf16.mxu1 %v509_v1  ;;  %394 = vmatpush3.bf16.msra.mxu0 %v393_v12  ;;  %v346_v26 = vld [vmem:[%s616_s6] ss:$0 sm:$0xff] }
  0x4f   :  { %395 = vmatprep.subr.bf16.mxu0 %v509_v1 }
  0x51   :  { %391 = vmatpush3.bf16.msra.mxu1 %v390_v9 }
  0x52   :  { %397 = vmatpush3.bf16.msra.mxu0 %v396_v20 }
 0x11f   :  { %v156_v14 = vpop.f32.mrb[0].mxu0 }
 0x120   :  { %v157_v15 = vadd.f32 %v341_v13, %v156_v14  ;;  %v363_v16 = vpop.f32.mrb[1].mxu0 }
 0x122   :  { %v160_v17 = vmax.f32 %v157_v15, 0.0 }
 0x124   :  { %373 = vmatmul.mubr.msk.f32.vlgmr.msra.gmra.mrb[0].mxu1 %vm172_vm2, %v160_v17 }
 0x1f7   :  { %v242_v22 = vpop.f32.mrb[0].mxu1 }
 0x1f8   :  { %v243_v23 = vadd.f32 %v343_v21, %v242_v22  ;;  %v374_v24 = vpop.f32.mrb[1].mxu1 }
 0x1fa   :  { %v246_v25 = vmax.f32 %v243_v23, 0.0 }
 0x1fc   :  { %384 = vmatmul.mubr.msk.f32.vlgmr.msra.gmra.mrb[2].mxu0 %vm172_vm2, %v246_v25 }
 0x2cf   :  { %v320_v27 = vpop.f32.mrb[2].mxu0 }
 0x2d0   :  { %v331_v28 = vadd.f32 %v346_v26, %v320_v27  ;;  %v385_v29 = vpop.f32.mrb[3].mxu0 }
 0x2d2   :  { %333 = vst.msk [vmem:[%s617_s7] sm:$0xff] %vm332_vm3, %v331_v28 }
 0x2d3   :  { %338 = vsyncpa [#allocation3], 1 }
 0x2d4   :  { %339 = vsyncpa [#allocation5], 1 }
 0x2d5   :  { %340 = vsyncpa [#allocation8], 1 }

</bundles_post_ra>
